<compile_context>
chip_gen: v7x
topology: tpu7x:2x2x1
jax: 0.10.0
libtpu: 0.0.40
codegen_flags: <defaults>
</compile_context>

<pallas_src>
import functools

import jax
import jax.numpy as jnp
from jax import lax
from jax.experimental import pallas as pl
from jax.experimental.pallas import tpu as pltpu


def _residual_kernel(W, xf_ref, w1_ref, w2_ref, w3_ref,
                     s1_ref, b1_ref, s2_ref, b2_ref, b3_ref,
                     m_ref, out_ref):
    """One image per grid step. All activations are (C, H*W): pixels in lanes."""
    HW = out_ref.shape[-1]

    def im2col(v):
        # v: (C, H*W). For tap (dy, dx) the patch is v shifted by dy*W+dx along
        # the flat pixel axis (an XLU lane roll); pixels whose 3x3 window falls
        # outside the image are zeroed by a precomputed mask -> zero padding.
        pieces = []
        for dy in (-1, 0, 1):
            for dx in (-1, 0, 1):
                s = dy * W + dx
                win = v if s == 0 else pltpu.roll(v, shift=(-s) % HW, axis=1)
                t = (dy + 1) * 3 + (dx + 1)
                if t != 4:                       # center tap needs no mask
                    win = win * m_ref[t:t + 1, :]
                pieces.append(win)
        return jnp.concatenate(pieces, axis=0)   # (9*C, H*W), 8-sublane aligned

    xv = xf_ref[...]                             # (CinP, H*W), loaded once

    # conv1 (3x3, pad=1) + folded bn1 + relu : single MXU matmul, lane-dense acc.
    acc1 = jnp.dot(w1_ref[...], im2col(xv), preferred_element_type=jnp.float32)
    y1 = jnp.maximum(acc1 * s1_ref[...] + b1_ref[...], 0.0)          # (Cout, H*W)

    # conv2 (3x3, pad=1) + folded bn2 : single MXU matmul.
    acc2 = jnp.dot(w2_ref[...], im2col(y1), preferred_element_type=jnp.float32)
    y2 = acc2 * s2_ref[...] + b2_ref[...]

    # conv3: 1x1 shortcut projection (+ bias) straight off the flat input.
    xs = jnp.dot(w3_ref[...], xv, preferred_element_type=jnp.float32) + b3_ref[...]

    # residual add + relu, full-width (256-lane) unmasked store.
    out_ref[...] = jnp.maximum(y2 + xs, 0.0).astype(out_ref.dtype)


def residual_forward(x_nchw, params, *, eps=1e-5):
    x = x_nchw.astype(jnp.float32)
    N, Cin, H, W = x.shape
    Cout = params["w1"].shape[0]
    HW = H * W
    CinP = ((Cin + 7) // 8) * 8          # pad input channels to the sublane tile

    # Channels-first, flattened-spatial input (pixels -> lanes). NCHW needs no
    # transpose, only a reshape + zero channel pad. This is layout plumbing.
    xf = x.reshape(N, Cin, HW)
    if CinP != Cin:
        xf = jnp.pad(xf, ((0, 0), (0, CinP - Cin), (0, 0)))

    # torch OIHW -> (O, KH*KW*Cpad) matching the kernel's im2col row order
    # (tap-major, channel-minor), with zero weights on the padded channels.
    def conv_w(w_oihw, cpad):
        o, i, kh, kw = w_oihw.shape
        w = jnp.transpose(w_oihw, (0, 2, 3, 1))                  # (O, KH, KW, I)
        w = jnp.pad(w, ((0, 0), (0, 0), (0, 0), (0, cpad - i)))
        return w.reshape(o, kh * kw * cpad).astype(jnp.float32)

    w1 = conv_w(params["w1"], CinP)                               # (Cout, 9*CinP)
    w2 = conv_w(params["w2"], Cout)                               # (Cout, 9*Cout)
    w3 = jnp.pad(params["w3"].reshape(Cout, Cin),
                 ((0, 0), (0, CinP - Cin))).astype(jnp.float32)   # (Cout, CinP)

    # Fold eval-mode BatchNorm + conv bias into per-channel scale/bias columns.
    s1 = params["bn1_gamma"] / jnp.sqrt(params["bn1_var"] + eps)
    b1 = params["bn1_beta"] + s1 * (params["b1"] - params["bn1_mean"])
    s2 = params["bn2_gamma"] / jnp.sqrt(params["bn2_var"] + eps)
    b2 = params["bn2_beta"] + s2 * (params["b2"] - params["bn2_mean"])
    b3 = params["b3"]
    col = lambda v: v.reshape(Cout, 1).astype(jnp.float32)

    # Per-tap validity masks (flat pixel index): 1.0 where the 3x3 window tap
    # stays inside the image, 0.0 where zero padding applies.
    ys_, xs_ = jnp.divmod(jnp.arange(HW, dtype=jnp.int32), W)
    masks = []
    for dy in (-1, 0, 1):
        for dx in (-1, 0, 1):
            ok = jnp.ones((HW,), jnp.bool_)
            if dy == -1:
                ok = ok & (ys_ >= 1)
            if dy == 1:
                ok = ok & (ys_ <= H - 2)
            if dx == -1:
                ok = ok & (xs_ >= 1)
            if dx == 1:
                ok = ok & (xs_ <= W - 2)
            masks.append(ok)
    tap_masks = jnp.stack(masks).astype(jnp.float32)              # (9, H*W)

    kernel = functools.partial(_residual_kernel, W)

    grid_spec = pltpu.PrefetchScalarGridSpec(
        num_scalar_prefetch=0,
        grid=(N,),  # one image per step; "parallel" -> shards across v7x's 2 TCs
        in_specs=[
            pl.BlockSpec((None, CinP, HW), lambda n: (n, 0, 0)),
            pl.BlockSpec((Cout, 9 * CinP), lambda n: (0, 0)),
            pl.BlockSpec((Cout, 9 * Cout), lambda n: (0, 0)),
            pl.BlockSpec((Cout, CinP), lambda n: (0, 0)),
            pl.BlockSpec((Cout, 1), lambda n: (0, 0)),
            pl.BlockSpec((Cout, 1), lambda n: (0, 0)),
            pl.BlockSpec((Cout, 1), lambda n: (0, 0)),
            pl.BlockSpec((Cout, 1), lambda n: (0, 0)),
            pl.BlockSpec((Cout, 1), lambda n: (0, 0)),
            pl.BlockSpec((9, HW), lambda n: (0, 0)),
        ],
        out_specs=pl.BlockSpec((None, Cout, HW), lambda n: (n, 0, 0)),
    )

    out = pl.pallas_call(
        kernel,
        out_shape=jax.ShapeDtypeStruct((N, Cout, HW), jnp.float32),
        grid_spec=grid_spec,
        compiler_params=pltpu.CompilerParams(dimension_semantics=("parallel",)),
    )(xf, w1, w2, w3, col(s1), col(b1), col(s2), col(b2), col(b3), tap_masks)

    return out.reshape(N, Cout, H, W)            # already NCHW


def residual_ref(x_nchw, params, *, eps=1e-5):
    """Pure-JAX reference (same semantics, lax.conv)."""
    x = jnp.transpose(x_nchw, (0, 2, 3, 1)).astype(jnp.float32)

    def conv(inp, w_oihw, pad):
        return lax.conv_general_dilated(
            inp, jnp.transpose(w_oihw, (2, 3, 1, 0)), (1, 1), pad,
            dimension_numbers=("NHWC", "HWIO", "NHWC"))

    def bn(y, g, b, m, v):
        return (y - m) / jnp.sqrt(v + eps) * g + b

    y = conv(x, params["w1"], [(1, 1), (1, 1)]) + params["b1"]
    y = jax.nn.relu(bn(y, params["bn1_gamma"], params["bn1_beta"],
                       params["bn1_mean"], params["bn1_var"]))
    y = conv(y, params["w2"], [(1, 1), (1, 1)]) + params["b2"]
    y = bn(y, params["bn2_gamma"], params["bn2_beta"],
           params["bn2_mean"], params["bn2_var"])
    xs = conv(x, params["w3"], [(0, 0), (0, 0)]) + params["b3"]
    out = jax.nn.relu(y + xs)
    return jnp.transpose(out, (0, 3, 1, 2))


def init_params(key, cin, cout):
    ks = jax.random.split(key, 12)
    return {
        "w1": 0.1 * jax.random.normal(ks[0], (cout, cin, 3, 3), jnp.float32),
        "b1": 0.1 * jax.random.normal(ks[1], (cout,), jnp.float32),
        "w2": 0.1 * jax.random.normal(ks[2], (cout, cout, 3, 3), jnp.float32),
        "b2": 0.1 * jax.random.normal(ks[3], (cout,), jnp.float32),
        "w3": 0.1 * jax.random.normal(ks[4], (cout, cin, 1, 1), jnp.float32),
        "b3": 0.1 * jax.random.normal(ks[5], (cout,), jnp.float32),
        "bn1_gamma": 1.0 + 0.1 * jax.random.normal(ks[6], (cout,), jnp.float32),
        "bn1_beta": 0.1 * jax.random.normal(ks[7], (cout,), jnp.float32),
        "bn1_mean": 0.05 * jax.random.normal(ks[8], (cout,), jnp.float32),
        "bn1_var": 1.0 + 0.1 * jax.random.uniform(ks[9], (cout,), jnp.float32),
        "bn2_gamma": 1.0 + 0.1 * jax.random.normal(ks[10], (cout,), jnp.float32),
        "bn2_beta": 0.1 * jax.random.normal(ks[11], (cout,), jnp.float32),
        "bn2_mean": jnp.zeros((cout,), jnp.float32),
        "bn2_var": jnp.ones((cout,), jnp.float32),
    }


if __name__ == "__main__":
    key = jax.random.PRNGKey(0)
    kx, kp = jax.random.split(key)
    N, Cin, Cout, S = 2, 4, 8, 16
    x = jax.random.normal(kx, (N, Cin, S, S), jnp.float32)   # NCHW, like PyTorch
    params = init_params(kp, Cin, Cout)

    out = jax.block_until_ready(residual_forward(x, params))
    ref = residual_ref(x, params)

    assert out.shape == (N, Cout, S, S), out.shape
    err = float(jnp.max(jnp.abs(out - ref)))
    assert err < 1e-4, f"max abs err {err}"
    print("KERNEL_OK")
</pallas_src>

<mosaic_0001>
module attributes {stable_mosaic.version = 11 : i64} {
  func.func @_residual_kernel(%arg0: i32, %arg1: memref<1x8x256xf32, #tpu.memory_space<vmem>>, %arg2: memref<8x72xf32, #tpu.memory_space<vmem>>, %arg3: memref<8x72xf32, #tpu.memory_space<vmem>>, %arg4: memref<8x8xf32, #tpu.memory_space<vmem>>, %arg5: memref<8x1xf32, #tpu.memory_space<vmem>>, %arg6: memref<8x1xf32, #tpu.memory_space<vmem>>, %arg7: memref<8x1xf32, #tpu.memory_space<vmem>>, %arg8: memref<8x1xf32, #tpu.memory_space<vmem>>, %arg9: memref<8x1xf32, #tpu.memory_space<vmem>>, %arg10: memref<9x256xf32, #tpu.memory_space<vmem>>, %arg11: memref<1x8x256xf32, #tpu.memory_space<vmem>>) attributes {dimension_semantics = [#tpu.dimension_semantics<parallel>], iteration_bounds = array<i64: 2>, scalar_prefetch = 0 : i64, scratch_operands = 0 : i64, tpu.core_type = #tpu.core_type<tc>, window_params = [{transform_indices = @transform_0, window_bounds = array<i64: 1, 8, 256>}, {pipeline_mode = #tpu.pipeline_mode<synchronous>, transform_indices = @transform_1, window_bounds = array<i64: 8, 72>}, {pipeline_mode = #tpu.pipeline_mode<synchronous>, transform_indices = @transform_2, window_bounds = array<i64: 8, 72>}, {pipeline_mode = #tpu.pipeline_mode<synchronous>, transform_indices = @transform_3, window_bounds = array<i64: 8, 8>}, {pipeline_mode = #tpu.pipeline_mode<synchronous>, transform_indices = @transform_4, window_bounds = array<i64: 8, 1>}, {pipeline_mode = #tpu.pipeline_mode<synchronous>, transform_indices = @transform_5, window_bounds = array<i64: 8, 1>}, {pipeline_mode = #tpu.pipeline_mode<synchronous>, transform_indices = @transform_6, window_bounds = array<i64: 8, 1>}, {pipeline_mode = #tpu.pipeline_mode<synchronous>, transform_indices = @transform_7, window_bounds = array<i64: 8, 1>}, {pipeline_mode = #tpu.pipeline_mode<synchronous>, transform_indices = @transform_8, window_bounds = array<i64: 8, 1>}, {pipeline_mode = #tpu.pipeline_mode<synchronous>, transform_indices = @transform_9, window_bounds = array<i64: 9, 256>}, {transform_indices = @transform_10, window_bounds = array<i64: 1, 8, 256>}]} {
    %c0 = arith.constant 0 : index
    %c0_0 = arith.constant 0 : index
    %c0_1 = arith.constant 0 : index
    %0 = vector.load %arg1[%c0, %c0_0, %c0_1] : memref<1x8x256xf32, #tpu.memory_space<vmem>>, vector<1x8x256xf32>
    %1 = vector.shape_cast %0 : vector<1x8x256xf32> to vector<8x256xf32>
    %c0_2 = arith.constant 0 : index
    %c0_3 = arith.constant 0 : index
    %2 = vector.load %arg2[%c0_2, %c0_3] : memref<8x72xf32, #tpu.memory_space<vmem>>, vector<8x72xf32>
    %c17_i32 = arith.constant 17 : i32
    %3 = tpu.dynamic_rotate %1 by %c17_i32 dim 1 : vector<8x256xf32>, i32 -> vector<8x256xf32>
    %c0_4 = arith.constant 0 : index
    %c0_5 = arith.constant 0 : index
    %4 = vector.load %arg10[%c0_4, %c0_5] : memref<9x256xf32, #tpu.memory_space<vmem>>, vector<1x256xf32>
    %5 = vector.broadcast %4 : vector<1x256xf32> to vector<8x256xf32>
    %6 = arith.mulf %3, %5 : vector<8x256xf32>
    %c16_i32 = arith.constant 16 : i32
    %7 = tpu.dynamic_rotate %1 by %c16_i32 dim 1 : vector<8x256xf32>, i32 -> vector<8x256xf32>
    %c1 = arith.constant 1 : index
    %c0_6 = arith.constant 0 : index
    %8 = vector.load %arg10[%c1, %c0_6] : memref<9x256xf32, #tpu.memory_space<vmem>>, vector<1x256xf32>
    %9 = vector.broadcast %8 : vector<1x256xf32> to vector<8x256xf32>
    %10 = arith.mulf %7, %9 : vector<8x256xf32>
    %c15_i32 = arith.constant 15 : i32
    %11 = tpu.dynamic_rotate %1 by %c15_i32 dim 1 : vector<8x256xf32>, i32 -> vector<8x256xf32>
    %c2 = arith.constant 2 : index
    %c0_7 = arith.constant 0 : index
    %12 = vector.load %arg10[%c2, %c0_7] : memref<9x256xf32, #tpu.memory_space<vmem>>, vector<1x256xf32>
    %13 = vector.broadcast %12 : vector<1x256xf32> to vector<8x256xf32>
    %14 = arith.mulf %11, %13 : vector<8x256xf32>
    %c1_i32 = arith.constant 1 : i32
    %15 = tpu.dynamic_rotate %1 by %c1_i32 dim 1 : vector<8x256xf32>, i32 -> vector<8x256xf32>
    %c3 = arith.constant 3 : index
    %c0_8 = arith.constant 0 : index
    %16 = vector.load %arg10[%c3, %c0_8] : memref<9x256xf32, #tpu.memory_space<vmem>>, vector<1x256xf32>
    %17 = vector.broadcast %16 : vector<1x256xf32> to vector<8x256xf32>
    %18 = arith.mulf %15, %17 : vector<8x256xf32>
    %c255_i32 = arith.constant 255 : i32
    %19 = tpu.dynamic_rotate %1 by %c255_i32 dim 1 : vector<8x256xf32>, i32 -> vector<8x256xf32>
    %c5 = arith.constant 5 : index
    %c0_9 = arith.constant 0 : index
    %20 = vector.load %arg10[%c5, %c0_9] : memref<9x256xf32, #tpu.memory_space<vmem>>, vector<1x256xf32>
    %21 = vector.broadcast %20 : vector<1x256xf32> to vector<8x256xf32>
    %22 = arith.mulf %19, %21 : vector<8x256xf32>
    %c241_i32 = arith.constant 241 : i32
    %23 = tpu.dynamic_rotate %1 by %c241_i32 dim 1 : vector<8x256xf32>, i32 -> vector<8x256xf32>
    %c6 = arith.constant 6 : index
    %c0_10 = arith.constant 0 : index
    %24 = vector.load %arg10[%c6, %c0_10] : memref<9x256xf32, #tpu.memory_space<vmem>>, vector<1x256xf32>
    %25 = vector.broadcast %24 : vector<1x256xf32> to vector<8x256xf32>
    %26 = arith.mulf %23, %25 : vector<8x256xf32>
    %c240_i32 = arith.constant 240 : i32
    %27 = tpu.dynamic_rotate %1 by %c240_i32 dim 1 : vector<8x256xf32>, i32 -> vector<8x256xf32>
    %c7 = arith.constant 7 : index
    %c0_11 = arith.constant 0 : index
    %28 = vector.load %arg10[%c7, %c0_11] : memref<9x256xf32, #tpu.memory_space<vmem>>, vector<1x256xf32>
    %29 = vector.broadcast %28 : vector<1x256xf32> to vector<8x256xf32>
    %30 = arith.mulf %27, %29 : vector<8x256xf32>
    %c239_i32 = arith.constant 239 : i32
    %31 = tpu.dynamic_rotate %1 by %c239_i32 dim 1 : vector<8x256xf32>, i32 -> vector<8x256xf32>
    %c8 = arith.constant 8 : index
    %c0_12 = arith.constant 0 : index
    %32 = vector.load %arg10[%c8, %c0_12] : memref<9x256xf32, #tpu.memory_space<vmem>>, vector<1x256xf32>
    %33 = vector.broadcast %32 : vector<1x256xf32> to vector<8x256xf32>
    %34 = arith.mulf %31, %33 : vector<8x256xf32>
    %35 = tpu.concatenate %6, %10, %14, %18, %1, %22, %26, %30, %34 in 0 : vector<8x256xf32>, vector<8x256xf32>, vector<8x256xf32>, vector<8x256xf32>, vector<8x256xf32>, vector<8x256xf32>, vector<8x256xf32>, vector<8x256xf32>, vector<8x256xf32> -> vector<72x256xf32>
    %cst = arith.constant dense<0.000000e+00> : vector<8x256xf32>
    %36 = tpu.matmul %2, %35, %cst {dimension_numbers = #tpu.dot_dimension_numbers<[1], [0], [0], [1], [0, 0, 1, 1], [], []>} : vector<8x72xf32>, vector<72x256xf32>, vector<8x256xf32> -> vector<8x256xf32>
    %c0_13 = arith.constant 0 : index
    %c0_14 = arith.constant 0 : index
    %37 = vector.load %arg5[%c0_13, %c0_14] : memref<8x1xf32, #tpu.memory_space<vmem>>, vector<8x1xf32>
    %38 = vector.broadcast %37 : vector<8x1xf32> to vector<8x256xf32>
    %39 = arith.mulf %36, %38 : vector<8x256xf32>
    %c0_15 = arith.constant 0 : index
    %c0_16 = arith.constant 0 : index
    %40 = vector.load %arg6[%c0_15, %c0_16] : memref<8x1xf32, #tpu.memory_space<vmem>>, vector<8x1xf32>
    %41 = vector.broadcast %40 : vector<8x1xf32> to vector<8x256xf32>
    %42 = arith.addf %39, %41 : vector<8x256xf32>
    %cst_17 = arith.constant 0.000000e+00 : f32
    %43 = vector.broadcast %cst_17 : f32 to vector<8x256xf32>
    %44 = arith.maximumf %42, %43 : vector<8x256xf32>
    %c0_18 = arith.constant 0 : index
    %c0_19 = arith.constant 0 : index
    %45 = vector.load %arg3[%c0_18, %c0_19] : memref<8x72xf32, #tpu.memory_space<vmem>>, vector<8x72xf32>
    %c17_i32_20 = arith.constant 17 : i32
    %46 = tpu.dynamic_rotate %44 by %c17_i32_20 dim 1 : vector<8x256xf32>, i32 -> vector<8x256xf32>
    %c0_21 = arith.constant 0 : index
    %c0_22 = arith.constant 0 : index
    %47 = vector.load %arg10[%c0_21, %c0_22] : memref<9x256xf32, #tpu.memory_space<vmem>>, vector<1x256xf32>
    %48 = vector.broadcast %47 : vector<1x256xf32> to vector<8x256xf32>
    %49 = arith.mulf %46, %48 : vector<8x256xf32>
    %c16_i32_23 = arith.constant 16 : i32
    %50 = tpu.dynamic_rotate %44 by %c16_i32_23 dim 1 : vector<8x256xf32>, i32 -> vector<8x256xf32>
    %c1_24 = arith.constant 1 : index
    %c0_25 = arith.constant 0 : index
    %51 = vector.load %arg10[%c1_24, %c0_25] : memref<9x256xf32, #tpu.memory_space<vmem>>, vector<1x256xf32>
    %52 = vector.broadcast %51 : vector<1x256xf32> to vector<8x256xf32>
    %53 = arith.mulf %50, %52 : vector<8x256xf32>
    %c15_i32_26 = arith.constant 15 : i32
    %54 = tpu.dynamic_rotate %44 by %c15_i32_26 dim 1 : vector<8x256xf32>, i32 -> vector<8x256xf32>
    %c2_27 = arith.constant 2 : index
    %c0_28 = arith.constant 0 : index
    %55 = vector.load %arg10[%c2_27, %c0_28] : memref<9x256xf32, #tpu.memory_space<vmem>>, vector<1x256xf32>
    %56 = vector.broadcast %55 : vector<1x256xf32> to vector<8x256xf32>
    %57 = arith.mulf %54, %56 : vector<8x256xf32>
    %c1_i32_29 = arith.constant 1 : i32
    %58 = tpu.dynamic_rotate %44 by %c1_i32_29 dim 1 : vector<8x256xf32>, i32 -> vector<8x256xf32>
    %c3_30 = arith.constant 3 : index
    %c0_31 = arith.constant 0 : index
    %59 = vector.load %arg10[%c3_30, %c0_31] : memref<9x256xf32, #tpu.memory_space<vmem>>, vector<1x256xf32>
    %60 = vector.broadcast %59 : vector<1x256xf32> to vector<8x256xf32>
    %61 = arith.mulf %58, %60 : vector<8x256xf32>
    %c255_i32_32 = arith.constant 255 : i32
    %62 = tpu.dynamic_rotate %44 by %c255_i32_32 dim 1 : vector<8x256xf32>, i32 -> vector<8x256xf32>
    %c5_33 = arith.constant 5 : index
    %c0_34 = arith.constant 0 : index
    %63 = vector.load %arg10[%c5_33, %c0_34] : memref<9x256xf32, #tpu.memory_space<vmem>>, vector<1x256xf32>
    %64 = vector.broadcast %63 : vector<1x256xf32> to vector<8x256xf32>
    %65 = arith.mulf %62, %64 : vector<8x256xf32>
    %c241_i32_35 = arith.constant 241 : i32
    %66 = tpu.dynamic_rotate %44 by %c241_i32_35 dim 1 : vector<8x256xf32>, i32 -> vector<8x256xf32>
    %c6_36 = arith.constant 6 : index
    %c0_37 = arith.constant 0 : index
    %67 = vector.load %arg10[%c6_36, %c0_37] : memref<9x256xf32, #tpu.memory_space<vmem>>, vector<1x256xf32>
    %68 = vector.broadcast %67 : vector<1x256xf32> to vector<8x256xf32>
    %69 = arith.mulf %66, %68 : vector<8x256xf32>
    %c240_i32_38 = arith.constant 240 : i32
    %70 = tpu.dynamic_rotate %44 by %c240_i32_38 dim 1 : vector<8x256xf32>, i32 -> vector<8x256xf32>
    %c7_39 = arith.constant 7 : index
    %c0_40 = arith.constant 0 : index
    %71 = vector.load %arg10[%c7_39, %c0_40] : memref<9x256xf32, #tpu.memory_space<vmem>>, vector<1x256xf32>
    %72 = vector.broadcast %71 : vector<1x256xf32> to vector<8x256xf32>
    %73 = arith.mulf %70, %72 : vector<8x256xf32>
    %c239_i32_41 = arith.constant 239 : i32
    %74 = tpu.dynamic_rotate %44 by %c239_i32_41 dim 1 : vector<8x256xf32>, i32 -> vector<8x256xf32>
    %c8_42 = arith.constant 8 : index
    %c0_43 = arith.constant 0 : index
    %75 = vector.load %arg10[%c8_42, %c0_43] : memref<9x256xf32, #tpu.memory_space<vmem>>, vector<1x256xf32>
    %76 = vector.broadcast %75 : vector<1x256xf32> to vector<8x256xf32>
    %77 = arith.mulf %74, %76 : vector<8x256xf32>
    %78 = tpu.concatenate %49, %53, %57, %61, %44, %65, %69, %73, %77 in 0 : vector<8x256xf32>, vector<8x256xf32>, vector<8x256xf32>, vector<8x256xf32>, vector<8x256xf32>, vector<8x256xf32>, vector<8x256xf32>, vector<8x256xf32>, vector<8x256xf32> -> vector<72x256xf32>
    %cst_44 = arith.constant dense<0.000000e+00> : vector<8x256xf32>
    %79 = tpu.matmul %45, %78, %cst_44 {dimension_numbers = #tpu.dot_dimension_numbers<[1], [0], [0], [1], [0, 0, 1, 1], [], []>} : vector<8x72xf32>, vector<72x256xf32>, vector<8x256xf32> -> vector<8x256xf32>
    %c0_45 = arith.constant 0 : index
    %c0_46 = arith.constant 0 : index
    %80 = vector.load %arg7[%c0_45, %c0_46] : memref<8x1xf32, #tpu.memory_space<vmem>>, vector<8x1xf32>
    %81 = vector.broadcast %80 : vector<8x1xf32> to vector<8x256xf32>
    %82 = arith.mulf %79, %81 : vector<8x256xf32>
    %c0_47 = arith.constant 0 : index
    %c0_48 = arith.constant 0 : index
    %83 = vector.load %arg8[%c0_47, %c0_48] : memref<8x1xf32, #tpu.memory_space<vmem>>, vector<8x1xf32>
    %84 = vector.broadcast %83 : vector<8x1xf32> to vector<8x256xf32>
    %85 = arith.addf %82, %84 : vector<8x256xf32>
    %c0_49 = arith.constant 0 : index
    %c0_50 = arith.constant 0 : index
    %86 = vector.load %arg4[%c0_49, %c0_50] : memref<8x8xf32, #tpu.memory_space<vmem>>, vector<8x8xf32>
    %cst_51 = arith.constant dense<0.000000e+00> : vector<8x256xf32>
    %87 = tpu.matmul %86, %1, %cst_51 {dimension_numbers = #tpu.dot_dimension_numbers<[1], [0], [0], [1], [0, 0, 1, 1], [], []>} : vector<8x8xf32>, vector<8x256xf32>, vector<8x256xf32> -> vector<8x256xf32>
    %c0_52 = arith.constant 0 : index
    %c0_53 = arith.constant 0 : index
    %88 = vector.load %arg9[%c0_52, %c0_53] : memref<8x1xf32, #tpu.memory_space<vmem>>, vector<8x1xf32>
    %89 = vector.broadcast %88 : vector<8x1xf32> to vector<8x256xf32>
    %90 = arith.addf %87, %89 : vector<8x256xf32>
    %91 = arith.addf %85, %90 : vector<8x256xf32>
    %cst_54 = arith.constant 0.000000e+00 : f32
    %92 = vector.broadcast %cst_54 : f32 to vector<8x256xf32>
    %93 = arith.maximumf %91, %92 : vector<8x256xf32>
    %c0_55 = arith.constant 0 : index
    %c0_56 = arith.constant 0 : index
    %c0_57 = arith.constant 0 : index
    %94 = vector.load %arg11[%c0_55, %c0_56, %c0_57] : memref<1x8x256xf32, #tpu.memory_space<vmem>>, vector<1x8x256xf32>
    %95 = vector.shape_cast %94 : vector<1x8x256xf32> to vector<8x256xf32>
    %96 = vector.shape_cast %93 : vector<8x256xf32> to vector<1x8x256xf32>
    tpu.vector_store %arg11[%c0_55, %c0_56, %c0_57], %96 {strides = array<i32>} : memref<1x8x256xf32, #tpu.memory_space<vmem>>, vector<1x8x256xf32>,
    return
  }
  func.func @transform_0(%arg0: i32) -> (i32, i32, i32) {
    %c0_i32 = arith.constant 0 : i32
    %c0_i32_0 = arith.constant 0 : i32
    %c0_i32_1 = arith.constant 0 : i32
    return %arg0, %c0_i32, %c0_i32_0 : i32, i32, i32
  }
  func.func @transform_1(%arg0: i32) -> (i32, i32) {
    %c0_i32 = arith.constant 0 : i32
    %c0_i32_0 = arith.constant 0 : i32
    %c0_i32_1 = arith.constant 0 : i32
    return %c0_i32, %c0_i32_0 : i32, i32
  }
  func.func @transform_2(%arg0: i32) -> (i32, i32) {
    %c0_i32 = arith.constant 0 : i32
    %c0_i32_0 = arith.constant 0 : i32
    %c0_i32_1 = arith.constant 0 : i32
    return %c0_i32, %c0_i32_0 : i32, i32
  }
  func.func @transform_3(%arg0: i32) -> (i32, i32) {
    %c0_i32 = arith.constant 0 : i32
    %c0_i32_0 = arith.constant 0 : i32
    %c0_i32_1 = arith.constant 0 : i32
    return %c0_i32, %c0_i32_0 : i32, i32
  }
  func.func @transform_4(%arg0: i32) -> (i32, i32) {
    %c0_i32 = arith.constant 0 : i32
    %c0_i32_0 = arith.constant 0 : i32
    %c0_i32_1 = arith.constant 0 : i32
    return %c0_i32, %c0_i32_0 : i32, i32
  }
  func.func @transform_5(%arg0: i32) -> (i32, i32) {
    %c0_i32 = arith.constant 0 : i32
    %c0_i32_0 = arith.constant 0 : i32
    %c0_i32_1 = arith.constant 0 : i32
    return %c0_i32, %c0_i32_0 : i32, i32
  }
  func.func @transform_6(%arg0: i32) -> (i32, i32) {
    %c0_i32 = arith.constant 0 : i32
    %c0_i32_0 = arith.constant 0 : i32
    %c0_i32_1 = arith.constant 0 : i32
    return %c0_i32, %c0_i32_0 : i32, i32
  }
  func.func @transform_7(%arg0: i32) -> (i32, i32) {
    %c0_i32 = arith.constant 0 : i32
    %c0_i32_0 = arith.constant 0 : i32
    %c0_i32_1 = arith.constant 0 : i32
    return %c0_i32, %c0_i32_0 : i32, i32
  }
  func.func @transform_8(%arg0: i32) -> (i32, i32) {
    %c0_i32 = arith.constant 0 : i32
    %c0_i32_0 = arith.constant 0 : i32
    %c0_i32_1 = arith.constant 0 : i32
    return %c0_i32, %c0_i32_0 : i32, i32
  }
  func.func @transform_9(%arg0: i32) -> (i32, i32) {
    %c0_i32 = arith.constant 0 : i32
    %c0_i32_0 = arith.constant 0 : i32
    %c0_i32_1 = arith.constant 0 : i32
    return %c0_i32, %c0_i32_0 : i32, i32
  }
  func.func @transform_10(%arg0: i32) -> (i32, i32, i32) {
    %c0_i32 = arith.constant 0 : i32
    %c0_i32_0 = arith.constant 0 : i32
    %c0_i32_1 = arith.constant 0 : i32
    return %arg0, %c0_i32, %c0_i32_0 : i32, i32, i32
  }
}

</mosaic_0001>

<bundles_post_ra>
// kernel: tpu_custom_call.1
= control target key start
LH: loop header
LB: loop body
LE: loop exit
PB: predicated region body
PF: predicated region fallthrough
CT: control target
= control target key end

     0   :  { %15 = vsyncpa [#allocation3], 0  ;;  %s1869_s0 = inlined_call_operand.vmem [shape: f32[2,8,256], index: 0, kind: input, shape index: {}]   ;;  %s1870_s1 = inlined_call_operand.hbm [shape: f32[8,72], index: 1, kind: input, shape index: {}]   ;;  %s1871_s2 = inlined_call_operand.hbm [shape: f32[8,72], index: 2, kind: input, shape index: {}]   ;;  %s1872_s3 = inlined_call_operand.hbm [shape: f32[8,8], index: 3, kind: input, shape index: {}]   ;;  %s1873_s4 = inlined_call_operand.vmem [shape: f32[8,1], index: 4, kind: input, shape index: {}]   ;;  %s1874_s5 = inlined_call_operand.vmem [shape: f32[8,1], index: 5, kind: input, shape index: {}]   ;;  %s1875_s6 = inlined_call_operand.vmem [shape: f32[8,1], index: 6, kind: input, shape index: {}]   ;;  %s1876_s7 = inlined_call_operand.vmem [shape: f32[8,1], index: 7, kind: input, shape index: {}]   ;;  %s1877_s8 = inlined_call_operand.vmem [shape: f32[8,1], index: 8, kind: input, shape index: {}]   ;;  %s1878_s9 = inlined_call_operand.vmem [shape: f32[9,256], index: 9, kind: input, shape index: {}]   ;;  %s1879_s10 = inlined_call_operand.hbm [shape: f32[2,8,256], index: 10, kind: output, shape index: {}]  }
   0x1   :  { %16 = vsyncpa [#allocation6], 0 }
   0x2   :  { %17 = vsyncpa [#allocation4], 0 }
   0x3   :  { %19 = vsyncpa [#allocation4 + $0x1], 0  ;;  %s1386_s13 = smov 0   ;;  %s1388_s14 = smov 0  }
   0x4   :  { %s1390_s15 = smov 0   ;;  %s1392_s16 = smov 0  }
   0x5 LB: > { %1887 = sst [smem:[#allocation12_spill]] %s1311_s15  ;;  %s1407_s17 = sadd.s32 4294967295, %s1315_s16   ;;  %s1315_s16 = sphi %s1392_s16, %s1904_s16   ;;  %s1311_s15 = sphi %s1390_s15, %s1906_s15   ;;  %s1307_s14 = sphi %s1388_s14, %s1908_s14   ;;  %s1303_s13 = sphi %s1386_s13, %s1907_s13  }
   0x6   : > { %s1017_s18 = sadd.s32 4294967294, %s1315_s16   ;;  %s1411_s19 = sadd.s32 1, %s1315_s16  }
   0x7   : > { %1888 = sst [smem:[#allocation13_spill]] %s1411_s19  ;;  %s247_s20 = sadd.s32 1, %s1311_s15 }
   0x8   : > { %s244_s21 = ssub.s32 %s1315_s16, %s1411_s19  ;;  %p257_p0 = scmp.ne.s32.totalorder %s1311_s15, %s1307_s14 }
   0x9   : > { %p245_p1 = scmp.eq.s32.totalorder %s244_s21, 0  ;;  %p258_p2 = scmp.eq.s32.totalorder %s1407_s17, 1 }
   0xa   : > { %p263_p3 = scmp.ne.s32.totalorder %s1307_s14, %s1303_s13  ;;  %p264_p4 = scmp.eq.s32.totalorder %s1017_s18, 1 }
   0xb   : > { %s1422_s22 = scalar_select %p245_p1, %s1311_s15, %s247_s20  }
   0xc   : > { %p1424_p5 = por %p258_p2, %p257_p0  ;;  %p1428_p6 = por %p264_p4, %p263_p3 }
   0xd   : > { %1889 = sst [smem:[#allocation14_spill]] %s1422_s22  ;;  %p1018_p7 = scmp.ge.s32.totalorder %s1315_s16, 1 }
   0xe   : > { %s1890_s23 = scalar_select %p1424_p5, 1, 0 }
   0xf   : > { %s1891_s24 = scalar_select %p1428_p6, 1, 0 }
  0x10   : > { %p271_p8 = scmp.lt.s32.totalorder %s1315_s16, 3  ;;  %p1881_p9 = scmp.eq.s32.totalorder %s1407_s17, 0 }
  0x11   : > { %1892 = sst [smem:[#allocation15_spill]] %s1891_s24  ;;  %s1317_s26 = smov [#allocation5]  }
  0x12   : > { %p1435_p10 = pnand %p1018_p7, %p271_p8  ;;  %s295_s27 = sshll.u32 %s1317_s26, 4  ;;  %s296_s27 = int_to_ptr.vmem [resolvable:$true] %s295_s27 }
  0x13   : > { %s1318_s28 = smov [#allocation2]   ;;  %s1319_s11 = smov [#allocation7]  }
  0x14   : > { %s1893_s25 = scalar_select %p1435_p10, 1, 0 }
  0x15   : > { %p1093_p11 = pneg %p1435_p10  ;;  %s284_s29 = sshll.u32 %s1318_s28, 4  ;;  %s1447_s29 = int_to_ptr.vmem [resolvable:$true] %s284_s29 }
  0x16   : > { %s306_s12 = sshll.u32 %s1319_s11, 4  ;;  %s1161_s21 = scalar_lea.hbm %s1871_s2, 128  ;;  %s1449_s12 = int_to_ptr.vmem [resolvable:$true] %s306_s12 }
  0x17   : > { %p1443_p12 = pnand %p1881_p9, %p1093_p11  ;;  %p1162_p13 = scmp.ne.s32.totalorder %s1871_s2, %s1161_s21 }
  0x18   : > { %p1168_p3 = scmp.lt.u32.totalorder %s1161_s21, %s1871_s2 }
  0x19   : > { %p1459_p0 = pneg %p1443_p12 }
  0x1b   : > { %p1164_p1 = pnand %p1459_p0, %p1162_p13 }
  0x1d   : > { %p1165_p2 = pneg %p1164_p1 }
  0x1f   : > { %p1170_p4 = pnand %p1168_p3, %p1165_p2 }
  0x21   : > { %1173 = shalt.err (!%p1170_p4)
}
  0x22   : > { %s1174_s18 = scalar_lea.vmem %s296_s27, 128  ;;  %p1182_p9 = scmp.lt.s32.totalorder %s296_s27, %s296_s27 }
  0x23   : > { %p1175_p7 = scmp.ne.s32.totalorder %s296_s27, %s1174_s18  ;;  %p1183_p6 = scmp.lt.s32.totalorder %s1174_s18, %s1174_s18 }
  0x25   : > { %p1177_p8 = pnand %p1175_p7, %p1459_p0  ;;  %p1184_p5 = por %p1183_p6, %p1182_p9 }
  0x27   : > { %p1178_p11 = pneg %p1177_p8 }
  0x29   : > { %p1185_p10 = pnand %p1184_p5, %p1178_p11 }
  0x2b   : > { %1188 = shalt.err (!%p1185_p10)
}
  0x2c   : > { %1099 = dma.hbm_to_vmem [thread:$0]  (!%p1443_p12), %s1871_s2, 128, %s296_s27, [#allocation6]  }
  0x2d   : > { %s1189_s26 = scalar_lea.hbm %s1870_s1, 128 }
  0x2e   : > { %p1190_p13 = scmp.ne.s32.totalorder %s1870_s1, %s1189_s26  ;;  %p1196_p5 = scmp.lt.u32.totalorder %s1189_s26, %s1870_s1 }
  0x30   : > { %p1192_p1 = pnand %p1190_p13, %p1459_p0 }
  0x32   : > { %p1193_p6 = pneg %p1192_p1 }
  0x34   : > { %p1198_p9 = pnand %p1196_p5, %p1193_p6 }
  0x36   : > { %1201 = shalt.err (!%p1198_p9)
}
  0x37   : > { %s1202_s27 = scalar_lea.vmem %s1447_s29, 128  ;;  %p1210_p4 = scmp.lt.s32.totalorder %s1447_s29, %s1447_s29 }
  0x38   : > { %p1203_p10 = scmp.ne.s32.totalorder %s1447_s29, %s1202_s27  ;;  %p1211_p7 = scmp.lt.s32.totalorder %s1202_s27, %s1202_s27 }
  0x3a   : > { %p1205_p2 = pnand %p1203_p10, %p1459_p0  ;;  %p1212_p8 = por %p1211_p7, %p1210_p4 }
  0x3c   : > { %p1206_p3 = pneg %p1205_p2 }
  0x3e   : > { %p1213_p11 = pnand %p1212_p8, %p1206_p3 }
  0x40   : > { %1216 = shalt.err (!%p1213_p11)
}
  0x41   : > { %1096 = dma.hbm_to_vmem [thread:$0]  (!%p1443_p12), %s1870_s1, 128, %s1447_s29, [#allocation3]  }
  0x42   : > { %s1217_s15 = scalar_lea.hbm %s1872_s3, 128 }
  0x43   : > { %p1218_p13 = scmp.ne.s32.totalorder %s1872_s3, %s1217_s15  ;;  %p1224_p5 = scmp.lt.u32.totalorder %s1217_s15, %s1872_s3 }
  0x45   : > { %p1220_p1 = pnand %p1218_p13, %p1459_p0 }
  0x47   : > { %p1221_p6 = pneg %p1220_p1 }
  0x49   : > { %p1226_p9 = pnand %p1224_p5, %p1221_p6 }
  0x4b   : > { %1229 = shalt.err (!%p1226_p9)
}
  0x4c   : > { %s1230_s29 = scalar_lea.vmem %s1449_s12, 128  ;;  %p1238_p4 = scmp.lt.s32.totalorder %s1449_s12, %s1449_s12 }
  0x4d   : > { %p1231_p10 = scmp.ne.s32.totalorder %s1449_s12, %s1230_s29  ;;  %p1239_p7 = scmp.lt.s32.totalorder %s1230_s29, %s1230_s29 }
  0x4f   : > { %p1233_p2 = pnand %p1231_p10, %p1459_p0  ;;  %p1240_p8 = por %p1239_p7, %p1238_p4 }
  0x51   : > { %p1234_p3 = pneg %p1233_p2 }
  0x53   : > { %p1241_p11 = pnand %p1240_p8, %p1234_p3 }
  0x55   : > { %1244 = shalt.err (!%p1241_p11)
}
  0x56   : > { %1102 = dma.hbm_to_vmem [thread:$0]  (!%p1443_p12), %s1872_s3, 128, %s1449_s12, [#allocation6]  }
  0x57   : > { %p1896_p13 = scmp.ne.s32.totalorder %s1893_s25, 0 }
  0x58   : > { %p1897_p1 = scmp.eq.s32.totalorder (!%p1896_p13), %s1407_s17, 0 }
  0x59   : > { %345 = sbr.rel (%p1896_p13) target bundleno = 862 (0x35e), region = 60 }
  0x60   : > { %1290 = dma.done.wait (%p1897_p1), [#allocation3], 128   ;;  %p1898_p0 = pmov %p1897_p1 }
  0x62   : > { %1292 = vsyncadd (%p1898_p0), [#allocation3], 4294967168  ;;  %p1899_p6 = pmov %p1898_p0 }
  0x63   : > { %p1900_p5 = pmov %p1898_p0 }
  0x64   : > { %1294 = dma.done.wait (%p1899_p6), [#allocation6], 256  }
  0x65   : > { %1296 = vsyncadd (%p1900_p5), [#allocation6], 4294967040  ;;  %p391_p9 = scmp.lt.s32.totalorder %s1407_s17, 1  ;;  %s1320_s22 = smov 16   ;;  %v1326_v2 = vmov 0.0   ;;  %v1327_v3 = vmov 0   ;;  %v403_v6 = vlaneseq }
  0x66   : > { %s1321_s20 = smov 17   ;;  %s1322_s15 = smov 15   ;;  %644 = vmatprep.mubr.f32.mxu0 %v1326_v2  ;;  %801 = vmatprep.mubr.f32.mxu1 %v1326_v2  ;;  %v651_v4 = vld [vmem:[%s1873_s4] sm:$0xff]  ;;  %vm576_vm8 = vcmask 588800   ;;  %vm831_vm9 = vcmask 64512  }
  0x67   : > { %s392_s30 = scalar_select %p391_p9, %s1407_s17, 1  ;;  %1159 = vset.pattern.permute.xlu0 %v1327_v3  ;;  %1160 = vset.pattern.permute.xlu1 %v1327_v3  ;;  %v659_v5 = vld [vmem:[%s1874_s5] sm:$0xff]  ;;  %v411_v7 = vshrl.u32 %v403_v6, 7  ;;  %v1580_v8 = vand.u32 127, %v403_v6 }
  0x68   : > { %s1323_s21 = smov 1   ;;  %s1324_s26 = smov 127   ;;  %v1030_v11 = vld [vmem:[%s1878_s9 + $0x1] ss:$8 sm:$0x3] }
  0x69   : > { %s1045_s12 = sshll.u32 %s392_s30, 4  ;;  %s1325_s11 = smov 113   ;;  %v1582_v9 = vsub.s32 0, %v411_v7  ;;  %v1584_v10 = vsub.s32 1, %v411_v7  ;;  %vm426_vm0 = vcmp.lt.s32.totalorder %v1580_v8, 16  ;;  %vm405_vm1 = vcmp.lt.s32.totalorder %v1580_v8, 17 }
  0x6a   : > { %s395_s24 = scalar_lea.vmem %s1869_s0, %s1045_s12  ;;  %s1328_s18 = smov 112   ;;  %v408_v12 = vld [vmem:[%s1878_s9] ss:$8 sm:$0x3]  ;;  %vm448_vm2 = vcmp.lt.s32.totalorder %v1580_v8, 15  ;;  %vm470_vm3 = vcmp.lt.s32.totalorder %v1580_v8, 1 }
  0x6b   : > { %v1536_v0 = vld [vmem:[%s395_s24] sm:$0xff]  ;;  %v1542_v1 = vld [vmem:[%s395_s24 + $0x8] sm:$0xff]  ;;  %s1329_s29 = smov 111   ;;  %v1595_v15 = vrot.slane %v1030_v11, %v1582_v9  ;;  %v1598_v16 = vrot.slane %v408_v12, %v1582_v9  ;;  %v1601_v17 = vrot.slane %v408_v12, %v1584_v10  ;;  %v1604_v18 = vrot.slane %v1030_v11, %v1584_v10  ;;  %v1036_v12 = vld [vmem:[%s1878_s9 + $0x10] ss:$8 sm:$0x3] }
  0x6c   : > { %422 = vrot.lane.b32.xlu1 %v1536_v0, %s1320_s22  ;;  %399 = vrot.lane.b32.xlu0 %v1536_v0, %s1321_s20  ;;  %v1031_v29 = vld [vmem:[%s1878_s9 + $0x2] ss:$8 sm:$0x3]  ;;  %v1032_v30 = vld [vmem:[%s1878_s9 + $0x3] ss:$8 sm:$0x3] }
  0x6d   : > { %v1627_v35 = vrot.slane %v1031_v29, %v1582_v9  ;;  %v1630_v36 = vrot.slane %v1031_v29, %v1584_v10  ;;  %v1633_v37 = vrot.slane %v1032_v30, %v1582_v9  ;;  %v1636_v38 = vrot.slane %v1032_v30, %v1584_v10  ;;  %v1033_v39 = vld [vmem:[%s1878_s9 + $0x5] ss:$8 sm:$0x3]  ;;  %v1034_v60 = vld [vmem:[%s1878_s9 + $0x6] ss:$8 sm:$0x3] }
  0x6e   : > { %vm492_vm4 = vcmp.lt.s32.totalorder %v1580_v8, 127  ;;  %v1651_v46 = vrot.slane %v1033_v39, %v1582_v9  ;;  %v1654_v47 = vrot.slane %v1033_v39, %v1584_v10  ;;  %v1035_v61 = vld [vmem:[%s1878_s9 + $0x7] ss:$8 sm:$0x3]  ;;  %vm514_vm5 = vcmp.lt.s32.totalorder %v1580_v8, 113  ;;  %s1046_s24 = sshll.u32 %s1407_s17, 8 }
  0x6f   : > { %v1679_v6 = vrot.slane %v1034_v60, %v1584_v10  ;;  %vm536_vm6 = vcmp.lt.s32.totalorder %v1580_v8, 112  ;;  %v1683_v7 = vrot.slane %v1035_v61, %v1582_v9  ;;  %v1686_v11 = vrot.slane %v1035_v61, %v1584_v10  ;;  %s1827_s28 = scalar_lea.hbm %s1879_s10, %s1046_s24  ;;  %p1901_p10 = scmp.ne.s32.totalorder %s1890_s23, 0 }
  0x70   : > { %424 = vrot.lane.b32.xlu1 %v1542_v1, %s1320_s22  ;;  %401 = vrot.lane.b32.xlu0 %v1542_v1, %s1321_s20  ;;  %vm558_vm7 = vcmp.lt.s32.totalorder %v1580_v8, 111  ;;  %s1330_s17 = smov [#allocation8]  }
  0x74   : > { %446 = vrot.lane.b32.xlu1 %v1542_v1, %s1322_s15  ;;  %444 = vrot.lane.b32.xlu0 %v1536_v0, %s1322_s15 }
  0x78   : > { %468 = vrot.lane.b32.xlu1 %v1542_v1, %s1323_s21  ;;  %466 = vrot.lane.b32.xlu0 %v1536_v0, %s1323_s21 }
  0x7c   : > { %490 = vrot.lane.b32.xlu1 %v1542_v1, %s1324_s26  ;;  %488 = vrot.lane.b32.xlu0 %v1536_v0, %s1324_s26 }
  0x80   : > { %512 = vrot.lane.b32.xlu1 %v1542_v1, %s1325_s11  ;;  %510 = vrot.lane.b32.xlu0 %v1536_v0, %s1325_s11 }
  0x84   : > { %534 = vrot.lane.b32.xlu1 %v1542_v1, %s1328_s18  ;;  %532 = vrot.lane.b32.xlu0 %v1536_v0, %s1328_s18 }
  0x88   : > { %556 = vrot.lane.b32.xlu1 %v1542_v1, %s1329_s29  ;;  %554 = vrot.lane.b32.xlu0 %v1536_v0, %s1329_s29 }
  0x8c   : > { %654 = vperm.xlu0 %1159, %v651_v4   ;;  %662 = vperm.xlu1 %1160, %v659_v5   ;;  %v1676_v5 = vrot.slane %v1034_v60, %v1582_v9 }
  0xde   : > { %v423_v13 = vpop.permute.xlu1 %422  ;;  %v400_v14 = vpop.permute.xlu0 %399 }
  0xe2   : > { %v425_v19 = vpop.permute.xlu1 %424  ;;  %v402_v20 = vpop.permute.xlu0 %401 }
  0xe3   : > { %v427_v21 = vsel %vm426_vm0, %v423_v13, %v425_v19  ;;  %v428_v22 = vsel %vm426_vm0, %v425_v19, %v423_v13  ;;  %v406_v23 = vsel %vm405_vm1, %v400_v14, %v402_v20  ;;  %v407_v24 = vsel %vm405_vm1, %v402_v20, %v400_v14 }
  0xe4   : > { %v442_v25 = vmul.f32 %v1595_v15, %v428_v22  ;;  %v420_v26 = vmul.f32 %v1598_v16, %v407_v24  ;;  %v421_v27 = vmul.f32 %v1601_v17, %v406_v23  ;;  %v443_v28 = vmul.f32 %v1604_v18, %v427_v21 }
  0xe5   : > { %v1701_v23 = vrot.slane %v1036_v12, %v1584_v10 }
  0xe6   : > { %v447_v31 = vpop.permute.xlu1 %446  ;;  %v445_v32 = vpop.permute.xlu0 %444  ;;  %v1047_v33 = vpack.c.bf16 %v443_v28, %v421_v27  ;;  %v1049_v34 = vpack.c.bf16 %v442_v25, %v420_v26  ;;  %v1708_v28 = vrot.slane %v1036_v12, %v1582_v9  ;;  %v824_v9 = vld [vmem:[#allocation7] sm:$0xff] }
  0xe7   : > { %v449_v40 = vsel %vm448_vm2, %v445_v32, %v447_v31  ;;  %v450_v41 = vsel %vm448_vm2, %v447_v31, %v445_v32 }
  0xe8   : > { %1048 = vmatprep.subr.bf16.mxu0 %v1047_v33  ;;  %v464_v48 = vmul.f32 %v1627_v35, %v450_v41  ;;  %v465_v49 = vmul.f32 %v1630_v36, %v449_v40  ;;  %v398_v40 = vld [vmem:[#allocation2] sm:$0xff] }
  0xe9   : > { %1050 = vmatpush1.bf16.msra.mxu0 %v1049_v34 }
  0xea   : > { %v469_v42 = vpop.permute.xlu1 %468  ;;  %v467_v43 = vpop.permute.xlu0 %466 }
  0xeb   : > { %v471_v44 = vsel %vm470_vm3, %v467_v43, %v469_v42  ;;  %v472_v45 = vsel %vm470_vm3, %v469_v42, %v467_v43 }
  0xec   : > { %v486_v50 = vmul.f32 %v1633_v37, %v472_v45  ;;  %v487_v51 = vmul.f32 %v1636_v38, %v471_v44 }
  0xee   : > { %v491_v52 = vpop.permute.xlu1 %490  ;;  %v489_v53 = vpop.permute.xlu0 %488  ;;  %v1051_v54 = vpack.c.bf16 %v487_v51, %v465_v49  ;;  %v1053_v55 = vpack.c.bf16 %v486_v50, %v464_v48 }
  0xef   : > { %v493_v56 = vsel %vm492_vm4, %v489_v53, %v491_v52  ;;  %v494_v57 = vsel %vm492_vm4, %v491_v52, %v489_v53  ;;  %v825_v53 = vld [vmem:[%s1877_s8] sm:$0xff] }
  0xf0   : > { %v508_v58 = vmul.f32 %v1651_v46, %v493_v56  ;;  %v509_v59 = vmul.f32 %v1654_v47, %v494_v57  ;;  %1052 = vmatprep.subr.bf16.mxu0 %v1051_v54 }
  0xf1   : > { %1054 = vmatpush1.bf16.msra.mxu0 %v1053_v55 }
  0xf2   : > { %v513_v62 = vpop.permute.xlu1 %512  ;;  %v511_v63 = vpop.permute.xlu0 %510  ;;  %v1055_v3 = vpack.c.bf16 %v509_v59, %v1542_v1  ;;  %v1057_v4 = vpack.c.bf16 %v508_v58, %v1536_v0 }
  0xf3   : > { %v515_v13 = vsel %vm514_vm5, %v511_v63, %v513_v62  ;;  %v516_v14 = vsel %vm514_vm5, %v513_v62, %v511_v63 }
  0xf4   : > { %1056 = vmatprep.subr.bf16.mxu0 %v1055_v3  ;;  %v530_v24 = vmul.f32 %v1676_v5, %v515_v13  ;;  %v531_v25 = vmul.f32 %v1679_v6, %v516_v14 }
  0xf5   : > { %1058 = vmatpush1.bf16.msra.mxu0 %v1057_v4 }
  0xf6   : > { %v535_v19 = vpop.permute.xlu1 %534  ;;  %v533_v20 = vpop.permute.xlu0 %532 }
  0xf7   : > { %v537_v21 = vsel %vm536_vm6, %v533_v20, %v535_v19  ;;  %v538_v22 = vsel %vm536_vm6, %v535_v19, %v533_v20 }
  0xf8   : > { %v552_v26 = vmul.f32 %v1683_v7, %v537_v21  ;;  %v553_v27 = vmul.f32 %v1686_v11, %v538_v22 }
  0xfa   : > { %v557_v29 = vpop.permute.xlu1 %556  ;;  %v1059_v30 = vpack.c.bf16 %v553_v27, %v531_v25  ;;  %v555_v31 = vpop.permute.xlu0 %554  ;;  %v1061_v32 = vpack.c.bf16 %v552_v26, %v530_v24 }
  0xfb   : > { %v559_v33 = vsel %vm558_vm7, %v555_v31, %v557_v29  ;;  %v560_v10 = vsel %vm558_vm7, %v557_v29, %v555_v31 }
  0xfc   : > { %1060 = vmatprep.subr.bf16.mxu0 %v1059_v30  ;;  %v575_v34 = vmul.f32 %v1701_v23, %v560_v10  ;;  %v574_v39 = vmul.f32 %v1708_v28, %v559_v33 }
  0xfd   : > { %1062 = vmatpush1.bf16.msra.mxu0 %v1061_v32 }
  0xfe   : > { %596 = vmatprep.subr.mxu0 %v575_v34 }
 0x101   : > { %597 = vmatpush1.msra.mxu0 %v574_v39 }
 0x102   : > { %1037 = vmatmul.mubr.msk.f32.vlgmr.msra.gmra.mrb[0].mxu0 %vm576_vm8, %v398_v40  ;;  %835 = vmatprep.subr.mxu0 %v1542_v1  ;;  %v816_v1 = vld [vmem:[%s1876_s7] sm:$0xff] }
 0x103   : > { %836 = vmatpush1.msra.mxu0 %v1536_v0  ;;  %899 = vmatprep.mubr.f32.mxu0 %v1326_v2  ;;  %v808_v0 = vld [vmem:[%s1875_s6] sm:$0xff] }
 0x106   : > { %1039 = vmatmul.mubr.msk.f32.vlgmr.msra.gmra.mrb[2].mxu0 %vm831_vm9, %v824_v9 }
 0x10b   : > { %v655_v41 = vpop.permute.xlu0 %654  ;;  %v663_v43 = vpop.permute.xlu1 %662 }
 0x1d5   : > { %v646_v42 = vpop.f32.mrb[0].mxu0 }
 0x1d6   : > { %v657_v44 = vmul.f32 %v655_v41, %v646_v42  ;;  %v648_v45 = vpop.f32.mrb[1].mxu0 }
 0x1d7   : > { %v658_v48 = vmul.f32 %v655_v41, %v648_v45 }
 0x1d8   : > { %v665_v49 = vadd.f32 %v663_v43, %v657_v44 }
 0x1d9   : > { %v666_v50 = vadd.f32 %v663_v43, %v658_v48  ;;  %v1762_v2 = vpop.f32.mrb[2].mxu0 }
 0x1da   : > { %v1720_v51 = vmax.f32 %v665_v49, 0.0  ;;  %v1767_v54 = vpop.f32.mrb[3].mxu0 }
 0x1db   : > { %v1722_v52 = vmax.f32 %v666_v50, 0.0 }
 0x1dc   : > { %670 = vrot.lane.b32.xlu1 %v1720_v51, %s1321_s20 }
 0x1dd   : > { %672 = vrot.lane.b32.xlu0 %v1722_v52, %s1321_s20  ;;  %s1249_s20 = sshll.u32 %s1330_s17, 4  ;;  %s1250_s20 = int_to_ptr.vmem [resolvable:$false] %s1249_s20 }
 0x1e0   : > { %678 = vrot.lane.b32.xlu1 %v1720_v51, %s1320_s22 }
 0x1e1   : > { %680 = vrot.lane.b32.xlu0 %v1722_v52, %s1320_s22 }
 0x1e4   : > { %686 = vrot.lane.b32.xlu1 %v1720_v51, %s1322_s15 }
 0x1e5   : > { %688 = vrot.lane.b32.xlu0 %v1722_v52, %s1322_s15  ;;  %s1251_s15 = scalar_lea.vmem %s1250_s20, 512 }
 0x1e8   : > { %694 = vrot.lane.b32.xlu1 %v1720_v51, %s1323_s21 }
 0x1e9   : > { %696 = vrot.lane.b32.xlu0 %v1722_v52, %s1323_s21 }
 0x1ec   : > { %702 = vrot.lane.b32.xlu1 %v1720_v51, %s1324_s26 }
 0x1ed   : > { %704 = vrot.lane.b32.xlu0 %v1722_v52, %s1324_s26 }
 0x1f0   : > { %710 = vrot.lane.b32.xlu1 %v1720_v51, %s1325_s11 }
 0x1f1   : > { %712 = vrot.lane.b32.xlu0 %v1722_v52, %s1325_s11 }
 0x1f4   : > { %718 = vrot.lane.b32.xlu1 %v1720_v51, %s1328_s18 }
 0x1f5   : > { %720 = vrot.lane.b32.xlu0 %v1722_v52, %s1328_s18  ;;  %s388_s18 = sand.u32 1, %s1307_s14  }
 0x1f6   : > { %s913_s25 = scalar_lea.sflag [#allocation4], %s388_s18 }
 0x1f8   : > { %726 = vrot.lane.b32.xlu1 %v1720_v51, %s1329_s29 }
 0x1f9   : > { %728 = vrot.lane.b32.xlu0 %v1722_v52, %s1329_s29  ;;  %s1027_s29 = sshll.u32 %s388_s18, 4 }
 0x1fa   : > { %s390_s27 = scalar_lea.vmem [#allocation8], %s1027_s29 }
 0x1fb   : > { %s927_s19 = sshll.u32 %s390_s27, 4  ;;  %s1829_s19 = int_to_ptr.vmem [resolvable:$true] %s927_s19 }
 0x1fc   : > { %811 = vperm.xlu1 %1160, %v808_v0   ;;  %s1245_s22 = scalar_lea.vmem %s1829_s19, 256  ;;  %p1252_p4 = scmp.lt.s32.totalorder %s1829_s19, %s1250_s20 }
 0x1fd   : > { %819 = vperm.xlu0 %1159, %v816_v1   ;;  %p1246_p12 = scmp.ne.s32.totalorder %s1829_s19, %s1245_s22  ;;  %p1253_p7 = scmp.lt.s32.totalorder %s1251_s15, %s1245_s22 }
 0x1ff   : > { %p1247_p2 = pnand %p1246_p12, %p1901_p10  ;;  %p1254_p8 = por %p1253_p7, %p1252_p4 }
 0x200   : > { %828 = vperm.xlu1 %1160, %v825_v53  }
 0x201   : > { %p1248_p3 = pneg %p1247_p2 }
 0x203   : > { %p1255_p11 = pnand %p1254_p8, %p1248_p3 }
 0x24e   : > { %v671_v55 = vpop.permute.xlu1 %670 }
 0x24f   : > { %v673_v56 = vpop.permute.xlu0 %672 }
 0x250   : > { %v674_v57 = vsel %vm405_vm1, %v671_v55, %v673_v56  ;;  %v675_v58 = vsel %vm405_vm1, %v673_v56, %v671_v55 }
 0x251   : > { %v676_v63 = vmul.f32 %v675_v58, %v1598_v16  ;;  %v677_v4 = vmul.f32 %v674_v57, %v1601_v17 }
 0x252   : > { %v679_v59 = vpop.permute.xlu1 %678 }
 0x253   : > { %v681_v60 = vpop.permute.xlu0 %680 }
 0x254   : > { %v682_v61 = vsel %vm426_vm0, %v679_v59, %v681_v60  ;;  %v683_v62 = vsel %vm426_vm0, %v681_v60, %v679_v59 }
 0x255   : > { %v684_v3 = vmul.f32 %v683_v62, %v1595_v15  ;;  %v685_v12 = vmul.f32 %v682_v61, %v1604_v18 }
 0x256   : > { %v687_v13 = vpop.permute.xlu1 %686 }
 0x257   : > { %v689_v14 = vpop.permute.xlu0 %688  ;;  %v1063_v19 = vpack.c.bf16 %v685_v12, %v677_v4  ;;  %v1065_v20 = vpack.c.bf16 %v684_v3, %v676_v63 }
 0x258   : > { %v690_v21 = vsel %vm448_vm2, %v687_v13, %v689_v14  ;;  %v691_v22 = vsel %vm448_vm2, %v689_v14, %v687_v13 }
 0x259   : > { %1064 = vmatprep.subr.bf16.mxu1 %v1063_v19  ;;  %v692_v18 = vmul.f32 %v691_v22, %v1627_v35  ;;  %v693_v25 = vmul.f32 %v690_v21, %v1630_v36 }
 0x25a   : > { %1066 = vmatpush1.bf16.msra.mxu1 %v1065_v20  ;;  %v695_v24 = vpop.permute.xlu1 %694 }
 0x25b   : > { %v697_v16 = vpop.permute.xlu0 %696 }
 0x25c   : > { %v698_v15 = vsel %vm470_vm3, %v695_v24, %v697_v16  ;;  %v699_v17 = vsel %vm470_vm3, %v697_v16, %v695_v24 }
 0x25d   : > { %v700_v26 = vmul.f32 %v699_v17, %v1633_v37  ;;  %v701_v27 = vmul.f32 %v698_v15, %v1636_v38 }
 0x25e   : > { %v703_v29 = vpop.permute.xlu1 %702 }
 0x25f   : > { %v705_v30 = vpop.permute.xlu0 %704  ;;  %v1067_v31 = vpack.c.bf16 %v701_v27, %v693_v25  ;;  %v1069_v32 = vpack.c.bf16 %v700_v26, %v692_v18 }
 0x260   : > { %v706_v33 = vsel %vm492_vm4, %v703_v29, %v705_v30  ;;  %v707_v10 = vsel %vm492_vm4, %v705_v30, %v703_v29 }
 0x261   : > { %v708_v34 = vmul.f32 %v706_v33, %v1651_v46  ;;  %v709_v35 = vmul.f32 %v707_v10, %v1654_v47  ;;  %1068 = vmatprep.subr.bf16.mxu1 %v1067_v31 }
 0x262   : > { %1070 = vmatpush1.bf16.msra.mxu1 %v1069_v32  ;;  %v711_v36 = vpop.permute.xlu1 %710 }
 0x263   : > { %v713_v37 = vpop.permute.xlu0 %712  ;;  %v1071_v38 = vpack.c.bf16 %v709_v35, %v1722_v52  ;;  %v1073_v39 = vpack.c.bf16 %v708_v34, %v1720_v51 }
 0x264   : > { %v714_v40 = vsel %vm514_vm5, %v711_v36, %v713_v37  ;;  %v715_v9 = vsel %vm514_vm5, %v713_v37, %v711_v36 }
 0x265   : > { %1072 = vmatprep.subr.bf16.mxu1 %v1071_v38  ;;  %v716_v43 = vmul.f32 %v714_v40, %v1676_v5  ;;  %v717_v44 = vmul.f32 %v715_v9, %v1679_v6  ;;  %v669_v6 = vld [vmem:[#allocation5] sm:$0xff] }
 0x266   : > { %1074 = vmatpush1.bf16.msra.mxu1 %v1073_v39  ;;  %v719_v41 = vpop.permute.xlu1 %718 }
 0x267   : > { %v721_v46 = vpop.permute.xlu0 %720 }
 0x268   : > { %v722_v47 = vsel %vm536_vm6, %v719_v41, %v721_v46  ;;  %v723_v42 = vsel %vm536_vm6, %v721_v46, %v719_v41 }
 0x269   : > { %v724_v45 = vmul.f32 %v722_v47, %v1683_v7  ;;  %v725_v48 = vmul.f32 %v723_v42, %v1686_v11 }
 0x26a   : > { %v727_v49 = vpop.permute.xlu1 %726 }
 0x26b   : > { %v729_v50 = vpop.permute.xlu0 %728  ;;  %v1075_v51 = vpack.c.bf16 %v725_v48, %v717_v44  ;;  %v1077_v52 = vpack.c.bf16 %v724_v45, %v716_v43 }
 0x26c   : > { %v731_v0 = vsel %vm558_vm7, %v729_v50, %v727_v49  ;;  %v730_v1 = vsel %vm558_vm7, %v727_v49, %v729_v50 }
 0x26d   : > { %v733_v53 = vmul.f32 %v731_v0, %v1701_v23  ;;  %1076 = vmatprep.subr.bf16.mxu1 %v1075_v51  ;;  %v732_v5 = vmul.f32 %v730_v1, %v1708_v28 }
 0x26e   : > { %1078 = vmatpush1.bf16.msra.mxu1 %v1077_v52 }
 0x26f   : > { %753 = vmatprep.subr.mxu1 %v733_v53 }
 0x272   : > { %754 = vmatpush1.msra.mxu1 %v732_v5 }
 0x273   : > { %1038 = vmatmul.mubr.msk.f32.vlgmr.msra.gmra.mrb[0].mxu1 %vm576_vm8, %v669_v6 }
 0x27b   : > { %v812_v7 = vpop.permute.xlu1 %811 }
 0x27c   : > { %v820_v57 = vpop.permute.xlu0 %819 }
 0x27f   : > { %v829_v11 = vpop.permute.xlu1 %828 }
 0x280   : > { %v902_v23 = vadd.f32 %v1762_v2, %v829_v11  ;;  %v904_v60 = vadd.f32 %v1767_v54, %v829_v11 }
 0x346   : > { %v803_v55 = vpop.f32.mrb[0].mxu1 }
 0x347   : > { %v814_v56 = vmul.f32 %v812_v7, %v803_v55  ;;  %v805_v8 = vpop.f32.mrb[1].mxu1 }
 0x348   : > { %v815_v58 = vmul.f32 %v812_v7, %v805_v8 }
 0x349   : > { %v822_v59 = vadd.f32 %v820_v57, %v814_v56 }
 0x34a   : > { %v823_v28 = vadd.f32 %v820_v57, %v815_v58 }
 0x34b   : > { %v906_v61 = vadd.f32 %v902_v23, %v822_v59 }
 0x34c   : > { %v907_v62 = vadd.f32 %v904_v60, %v823_v28 }
 0x34d   : > { %v908_v63 = vmax.f32 %v906_v61, 0.0 }
 0x34e   : > { %v909_v3 = vmax.f32 %v907_v62, 0.0 }
 0x34f   : > { %910 = vst [vmem:[%s390_s27] sm:$0xff] %v908_v63 }
 0x350   : > { %911 = vst [vmem:[%s390_s27 + $0x8] sm:$0xff] %v909_v3 }
 0x351   : > { %1258 = shalt.err (!%p1255_p11)
}
 0x352   : > { %s1259_s21 = scalar_lea.hbm %s1827_s28, 256  ;;  %s1263_s18 = scalar_lea.hbm %s1879_s10, 512 }
 0x353   : > { %p1260_p13 = scmp.ne.s32.totalorder %s1827_s28, %s1259_s21  ;;  %p1264_p6 = scmp.lt.u32.totalorder %s1827_s28, %s1879_s10 }
 0x354   : > { %p1265_p5 = scmp.lt.u32.totalorder %s1263_s18, %s1259_s21  ;;  %p1267_p12 = scmp.lt.u32.totalorder %s1259_s21, %s1827_s28 }
 0x355   : > { %p1261_p1 = pnand %p1260_p13, %p1901_p10 }
 0x356   : > { %p1266_p9 = por %p1265_p5, %p1264_p6 }
 0x357   : > { %p1262_p0 = pneg %p1261_p1 }
 0x358   : > { %p1268_p2 = por %p1267_p12, %p1266_p9 }
 0x35a   : > { %p1269_p3 = pnand %p1268_p2, %p1262_p0 }
 0x35c   : > { %1272 = shalt.err (!%p1269_p3)
}
 0x35d   : > { %1091 = dma.vmem_to_hbm [thread:$0]  (%p1901_p10), %s1829_s19, 256, %s1827_s28, %s913_s25  }
 0x35e PF: > { %s1902_s27 = sld [smem:[#allocation15_spill]]  ;;  %p1113_p4 = scmp.ge.s32.totalorder %s1315_s16, 2 }
 0x35f   : > { %s939_s30 = sand.u32 1, %s1303_s13  }
 0x360   : > { %s940_s12 = scalar_lea.sflag [#allocation4], %s939_s30 }
 0x364   : > { %p1903_p7 = scmp.ne.s32.totalorder %s1902_s27, 0 }
 0x366   : > { %p1104_p8 = pnand %p1113_p4, %p1903_p7 }
 0x368   : > { %1298 = dma.done.wait (!%p1104_p8), %s940_s12, 256  }
 0x369   : > { %1300 = vsyncadd (!%p1104_p8), %s940_s12, 4294967040  ;;  %s1904_s16 = sld [smem:[#allocation13_spill]]  ;;  %s1905_s22 = sld [smem:[#allocation12_spill]] }
 0x36a   : > { %s1906_s15 = sld [smem:[#allocation14_spill]]  ;;  %s1907_s13 = smov %s1307_s14 }
 0x36f   : > { %p22_p11 = scmp.ge.s32.totalorder %s1904_s16, 4   ;;  %s1908_s14 = smov %s1905_s22 }
 0x371   :  { %24 = sbr.rel (!%p22_p11) target bundleno = 5 (0x5), region = 115 }
 0x378   :  { %945 = vsyncpa [#allocation3], 1 }
 0x379   :  { %947 = vsyncpa [#allocation3 + $0x1], 1 }
 0x37a   :  { %948 = vsyncpa [#allocation6], 1 }
 0x37b   :  { %949 = vsyncpa [#allocation4], 1 }
 0x37c   :  { %951 = vsyncpa [#allocation4 + $0x1], 1 }

</bundles_post_ra>
